<compile_context>
chip_gen: v7x
topology: tpu7x:2x2x1
jax: 0.10.0
libtpu: 0.0.40
codegen_flags: <defaults>
</compile_context>

<pallas_src>
import math
import jax
import jax.numpy as jnp
from jax.experimental import pallas as pl
from jax.experimental.pallas import tpu as pltpu

LANE = 128
SUBLANE = 8


def _round_up(x, m):
    return ((x + m - 1) // m) * m


# ----------------------------------------------------------------------------
# Kernel: whole 3-layer MLP fused; BN already folded into w1/w2 (packed as w12).
# ----------------------------------------------------------------------------
def make_mlp_kernel(hid_p, out_p, matmul_dtype):
    def mlp_kernel(x_ref, w0_ref, w12_ref, b_ref, o_ref):
        # layer 0: Linear -> ReLU  (dropout = identity in eval; BN folded ahead)
        x = x_ref[...].astype(matmul_dtype)           # bf16 cast inside kernel
        h = jnp.dot(x, w0_ref[...], preferred_element_type=jnp.float32)
        h = jnp.maximum(h + b_ref[0:1, :hid_p], 0.0)
        # layer 1: Linear -> ReLU  (w1 = lanes [0, hid_p) of packed w12)
        h = jnp.dot(h.astype(matmul_dtype), w12_ref[:, :hid_p],
                    preferred_element_type=jnp.float32)
        h = jnp.maximum(h + b_ref[1:2, :hid_p], 0.0)
        # final layer: Linear -> Softplus  (w2 = lanes [hid_p, hid_p+out_p))
        y = jnp.dot(h.astype(matmul_dtype), w12_ref[:, hid_p:],
                    preferred_element_type=jnp.float32)
        y = y + b_ref[2:3, :out_p]
        sp = jnp.maximum(y, 0.0) + jnp.log1p(jnp.exp(-jnp.abs(y)))
        o_ref[...] = sp.astype(o_ref.dtype)

    return mlp_kernel


# ----------------------------------------------------------------------------
# Parameter construction (PyTorch-equivalent, eval mode) and kernel prep.
# ----------------------------------------------------------------------------
def xavier_uniform(key, out_f, in_f):
    # matches torch.nn.init.xavier_uniform_ for a [out_f, in_f] weight
    a = math.sqrt(6.0 / (in_f + out_f))
    return jax.random.uniform(key, (out_f, in_f), jnp.float32, -a, a)


def make_params(key, in_c, hid, out_c):
    """PyTorch-layout params: Linear weights [out, in], zero biases,
    BatchNorm1d with gamma=1, beta=0, running_mean=0, running_var=1."""
    k0, k1, k2 = jax.random.split(key, 3)
    zeros = lambda n: jnp.zeros((n,), jnp.float32)
    ones = lambda n: jnp.ones((n,), jnp.float32)
    return dict(
        w0=xavier_uniform(k0, hid, in_c), b0=zeros(hid),
        w1=xavier_uniform(k1, hid, hid), b1=zeros(hid),
        w2=xavier_uniform(k2, out_c, hid), b2=zeros(out_c),
        bn0_gamma=ones(hid), bn0_beta=zeros(hid),
        bn0_mean=zeros(hid), bn0_var=ones(hid),
        bn1_gamma=ones(hid), bn1_beta=zeros(hid),
        bn1_mean=zeros(hid), bn1_var=ones(hid),
    )


def prepare_kernel_params(p, eps=1e-5, matmul_dtype=jnp.bfloat16):
    """Transpose weights to [in, out], fold BN into the following Linear,
    zero-pad hidden/out feature dims to 128, pack w1|w2 and the 3 biases."""
    w0, w1, w2 = p["w0"].T, p["w1"].T, p["w2"].T
    b0, b1, b2 = p["b0"], p["b1"], p["b2"]

    # BN(h) = h*s + t  =>  BN(h) @ W + b = h @ (diag(s) @ W) + (t @ W + b)
    s0 = p["bn0_gamma"] / jnp.sqrt(p["bn0_var"] + eps)
    t0 = p["bn0_beta"] - p["bn0_mean"] * s0
    s1 = p["bn1_gamma"] / jnp.sqrt(p["bn1_var"] + eps)
    t1 = p["bn1_beta"] - p["bn1_mean"] * s1
    w1f, b1f = s0[:, None] * w1, t0 @ w1 + b1
    w2f, b2f = s1[:, None] * w2, t1 @ w2 + b2

    in_c, hid = w0.shape
    out_c = w2.shape[1]
    hid_p, out_p = _round_up(hid, LANE), _round_up(out_c, LANE)
    bw = max(hid_p, out_p)

    def pad2(w, rows, cols):
        return jnp.pad(w, ((0, rows - w.shape[0]), (0, cols - w.shape[1])))

    # w0: contraction dim K kept at the TRUE in_c (no K padding).
    w0p = pad2(w0, in_c, hid_p).astype(matmul_dtype)
    # w1|w2 share the hid_p leading dim -> one packed operand, one fewer DMA.
    w12 = jnp.concatenate(
        [pad2(w1f, hid_p, hid_p), pad2(w2f, hid_p, out_p)], axis=1
    ).astype(matmul_dtype)

    # pack the 3 bias rows into one lane-padded f32 operand (single DMA)
    bias = jnp.zeros((3, bw), jnp.float32)
    bias = bias.at[0, :hid].set(b0)
    bias = bias.at[1, :hid].set(b1f)
    bias = bias.at[2, :out_c].set(b2f)

    dims = dict(in_c=in_c, hid=hid, out_c=out_c,
                hid_p=hid_p, out_p=out_p, bw=bw)
    return dict(w0=w0p, w12=w12, bias=bias, dims=dims, matmul_dtype=matmul_dtype)


# ----------------------------------------------------------------------------
# VMEM budgeting / tile selection (generation-aware).
# ----------------------------------------------------------------------------
def _num_tensorcores():
    """2 TensorCores per chip on v7x; 1 on v5e/v6e. Default 1 on failure."""
    try:
        kind = (getattr(jax.devices()[0], "device_kind", "") or "").lower()
        return 2 if "v7" in kind else 1
    except Exception:
        return 1


def _vmem_estimate(tm, d, single_buffer_weights=True):
    """Rough per-step VMEM footprint in bytes (lane-padded, f32 intermediates)."""
    in_c, hid_p, out_p, bw = d["in_c"], d["hid_p"], d["out_p"], d["bw"]
    wb = 1 if single_buffer_weights else 2
    total = 0
    total += 2 * tm * _round_up(in_c, LANE) * 4                 # x tile (double buf)
    total += 2 * tm * out_p * 4                                  # out tile (double buf)
    total += wb * (in_c * hid_p + hid_p * (hid_p + out_p)) * 2   # bf16 weights
    total += wb * SUBLANE * bw * 4                               # packed bias
    total += tm * (3 * hid_p + 2 * out_p) * 4                    # f32 intermediates
    return total


def _choose_tm(n, n_cores, d, vmem_budget=40 << 20, row_cap=1024):
    if n_cores >= 2 and n > 256:
        # v7x: even number of row blocks across the 2 TensorCores.
        steps = max(2, pl.cdiv(n, row_cap))
        if steps % 2:
            steps += 1
        tm = min(n, _round_up(pl.cdiv(n, steps), SUBLANE))
    else:
        # single TensorCore: the grid is a serial loop -> largest tile that fits
        # (whole batch in one block when possible).
        tm = n
    while tm > SUBLANE and _vmem_estimate(tm, d) > vmem_budget:
        tm = max(SUBLANE, _round_up(tm // 2, SUBLANE))
    return tm


# ----------------------------------------------------------------------------
# Forward wrapper.
# ----------------------------------------------------------------------------
def _mlp_call(x, kp, tm, out_dtype, single_buffer):
    d = kp["dims"]
    N = x.shape[0]
    grid = (pl.cdiv(N, tm),)

    const = lambda i: (0, 0)
    if single_buffer:
        # grid-invariant operands: fetched once, no need to double-buffer
        wspec = lambda shape: pl.BlockSpec(shape, const, pipeline_mode=pl.Buffered(1))
    else:
        wspec = lambda shape: pl.BlockSpec(shape, const)

    est = _vmem_estimate(tm, d, single_buffer_weights=single_buffer)
    vmem_limit = int(min(64 << 20, max(32 << 20, 1.5 * est)))

    flops = 2 * N * (d["in_c"] * d["hid_p"]
                     + d["hid_p"] * d["hid_p"]
                     + d["hid_p"] * d["out_p"])
    transcendentals = 2 * N * d["out_p"]  # exp + log1p in softplus
    bytes_accessed = (N * d["in_c"] * 4
                      + (d["in_c"] * d["hid_p"]
                         + d["hid_p"] * (d["hid_p"] + d["out_p"])) * 2
                      + 3 * d["bw"] * 4
                      + N * d["out_p"] * jnp.dtype(out_dtype).itemsize)

    return pl.pallas_call(
        make_mlp_kernel(d["hid_p"], d["out_p"], kp["matmul_dtype"]),
        out_shape=jax.ShapeDtypeStruct((N, d["out_p"]), out_dtype),
        grid=grid,
        in_specs=[
            pl.BlockSpec((tm, d["in_c"]), lambda i: (i, 0)),   # x row tile (true in_c)
            wspec((d["in_c"], d["hid_p"])),                    # w0 (K = in_c, unpadded)
            wspec((d["hid_p"], d["hid_p"] + d["out_p"])),      # packed w1|w2 (BN folded)
            wspec((3, d["bw"])),                               # packed biases
        ],
        out_specs=pl.BlockSpec((tm, d["out_p"]), lambda i: (i, 0)),
        compiler_params=pltpu.CompilerParams(
            dimension_semantics=("parallel",),
            vmem_limit_bytes=vmem_limit),
        cost_estimate=pl.CostEstimate(flops=int(flops),
                                      transcendentals=int(transcendentals),
                                      bytes_accessed=int(bytes_accessed)),
    )(x, kp["w0"], kp["w12"], kp["bias"])


def mlp_forward(x, kp, tm=None, out_dtype=jnp.float32):
    """x: [N, in_channels] float32.  kp: output of prepare_kernel_params."""
    d = kp["dims"]
    assert x.ndim == 2
    N, in_c = x.shape
    assert in_c == d["in_c"]

    if tm is None:
        tm = _choose_tm(N, _num_tensorcores(), d)
    else:
        assert tm == N or tm % SUBLANE == 0, \
            "tm must be a multiple of 8 (sublane) or equal to N"
        tm = min(tm, N)

    try:
        out = _mlp_call(x, kp, tm, out_dtype, single_buffer=True)
    except Exception:
        # pipeline_mode=pl.Buffered(1) not supported on this jax version:
        # fall back to default (double) buffering of the invariant operands.
        out = _mlp_call(x, kp, tm, out_dtype, single_buffer=False)

    # lane slice only (output already has exactly N rows); padded lanes hold
    # softplus(0)=ln 2 and are dropped here.
    return out[:, :d["out_c"]]


# ----------------------------------------------------------------------------
# Pure-JAX reference mirroring the PyTorch eval-mode forward (f32, unfolded).
# ----------------------------------------------------------------------------
def mlp_reference(x, p, eps=1e-5):
    def bn(h, g, b, m, v):
        return (h - m) / jnp.sqrt(v + eps) * g + b

    h = x @ p["w0"].T + p["b0"]
    h = jnp.maximum(h, 0.0)
    # dropout is identity in eval mode
    h = bn(h, p["bn0_gamma"], p["bn0_beta"], p["bn0_mean"], p["bn0_var"])
    h = h @ p["w1"].T + p["b1"]
    h = jnp.maximum(h, 0.0)
    h = bn(h, p["bn1_gamma"], p["bn1_beta"], p["bn1_mean"], p["bn1_var"])
    y = h @ p["w2"].T + p["b2"]
    return jax.nn.softplus(y)


if __name__ == "__main__":
    # num_layers = 3 MLP: in=16 -> hidden=32 -> hidden=32 -> out=8, batch N=64
    N, in_c, hid, out_c = 64, 16, 32, 8
    key = jax.random.PRNGKey(0)
    kx, kparam = jax.random.split(key)
    x = jax.random.normal(kx, (N, in_c), jnp.float32)

    params = make_params(kparam, in_c, hid, out_c)
    kernel_params = prepare_kernel_params(params, matmul_dtype=jnp.bfloat16)

    out = jax.block_until_ready(mlp_forward(x, kernel_params))

    ref = mlp_reference(x, params)
    assert out.shape == (N, out_c)
    assert bool(jnp.all(jnp.isfinite(out)))
    # bf16 matmul operands (f32 accumulation) => loosened tolerance vs f32 reference
    assert jnp.allclose(out, ref, atol=5e-2, rtol=5e-2), "mismatch vs reference"
    print("KERNEL_OK")
</pallas_src>

<mosaic_0001>
module attributes {stable_mosaic.version = 11 : i64} {
  func.func @mlp_kernel(%arg0: i32, %arg1: memref<64x16xf32, #tpu.memory_space<vmem>>, %arg2: memref<16x128xbf16, #tpu.memory_space<vmem>>, %arg3: memref<128x256xbf16, #tpu.memory_space<vmem>>, %arg4: memref<3x128xf32, #tpu.memory_space<vmem>>, %arg5: memref<64x128xf32, #tpu.memory_space<vmem>>) attributes {dimension_semantics = [#tpu.dimension_semantics<parallel>], iteration_bounds = array<i64: 1>, scalar_prefetch = 0 : i64, scratch_operands = 0 : i64, tpu.core_type = #tpu.core_type<tc>, window_params = [{transform_indices = @transform_0, window_bounds = array<i64: 64, 16>}, {pipeline_mode = #tpu.pipeline_mode<synchronous>, transform_indices = @transform_1, window_bounds = array<i64: 16, 128>}, {pipeline_mode = #tpu.pipeline_mode<synchronous>, transform_indices = @transform_2, window_bounds = array<i64: 128, 256>}, {pipeline_mode = #tpu.pipeline_mode<synchronous>, transform_indices = @transform_3, window_bounds = array<i64: 3, 128>}, {transform_indices = @transform_4, window_bounds = array<i64: 64, 128>}]} {
    %c0 = arith.constant 0 : index
    %c0_0 = arith.constant 0 : index
    %0 = vector.load %arg1[%c0, %c0_0] : memref<64x16xf32, #tpu.memory_space<vmem>>, vector<64x16xf32>
    %1 = arith.truncf %0 : vector<64x16xf32> to vector<64x16xbf16>
    %c0_1 = arith.constant 0 : index
    %c0_2 = arith.constant 0 : index
    %2 = vector.load %arg2[%c0_1, %c0_2] : memref<16x128xbf16, #tpu.memory_space<vmem>>, vector<16x128xbf16>
    %cst = arith.constant dense<0.000000e+00> : vector<64x128xf32>
    %3 = tpu.matmul %1, %2, %cst {dimension_numbers = #tpu.dot_dimension_numbers<[1], [0], [0], [1], [0, 0, 1, 1], [], []>} : vector<64x16xbf16>, vector<16x128xbf16>, vector<64x128xf32> -> vector<64x128xf32>
    %c0_3 = arith.constant 0 : index
    %c0_4 = arith.constant 0 : index
    %4 = vector.load %arg4[%c0_3, %c0_4] : memref<3x128xf32, #tpu.memory_space<vmem>>, vector<1x128xf32>
    %5 = vector.broadcast %4 : vector<1x128xf32> to vector<64x128xf32>
    %6 = arith.addf %3, %5 : vector<64x128xf32>
    %cst_5 = arith.constant 0.000000e+00 : f32
    %7 = vector.broadcast %cst_5 : f32 to vector<64x128xf32>
    %8 = arith.maximumf %6, %7 : vector<64x128xf32>
    %9 = arith.truncf %8 : vector<64x128xf32> to vector<64x128xbf16>
    %c0_6 = arith.constant 0 : index
    %c0_7 = arith.constant 0 : index
    %10 = vector.load %arg3[%c0_6, %c0_7] : memref<128x256xbf16, #tpu.memory_space<vmem>>, vector<128x128xbf16>
    %cst_8 = arith.constant dense<0.000000e+00> : vector<64x128xf32>
    %11 = tpu.matmul %9, %10, %cst_8 {dimension_numbers = #tpu.dot_dimension_numbers<[1], [0], [0], [1], [0, 0, 1, 1], [], []>} : vector<64x128xbf16>, vector<128x128xbf16>, vector<64x128xf32> -> vector<64x128xf32>
    %c1 = arith.constant 1 : index
    %c0_9 = arith.constant 0 : index
    %12 = vector.load %arg4[%c1, %c0_9] : memref<3x128xf32, #tpu.memory_space<vmem>>, vector<1x128xf32>
    %13 = vector.broadcast %12 : vector<1x128xf32> to vector<64x128xf32>
    %14 = arith.addf %11, %13 : vector<64x128xf32>
    %cst_10 = arith.constant 0.000000e+00 : f32
    %15 = vector.broadcast %cst_10 : f32 to vector<64x128xf32>
    %16 = arith.maximumf %14, %15 : vector<64x128xf32>
    %17 = arith.truncf %16 : vector<64x128xf32> to vector<64x128xbf16>
    %c0_11 = arith.constant 0 : index
    %c128 = arith.constant 128 : index
    %18 = vector.load %arg3[%c0_11, %c128] : memref<128x256xbf16, #tpu.memory_space<vmem>>, vector<128x128xbf16>
    %cst_12 = arith.constant dense<0.000000e+00> : vector<64x128xf32>
    %19 = tpu.matmul %17, %18, %cst_12 {dimension_numbers = #tpu.dot_dimension_numbers<[1], [0], [0], [1], [0, 0, 1, 1], [], []>} : vector<64x128xbf16>, vector<128x128xbf16>, vector<64x128xf32> -> vector<64x128xf32>
    %c2 = arith.constant 2 : index
    %c0_13 = arith.constant 0 : index
    %20 = vector.load %arg4[%c2, %c0_13] : memref<3x128xf32, #tpu.memory_space<vmem>>, vector<1x128xf32>
    %21 = vector.broadcast %20 : vector<1x128xf32> to vector<64x128xf32>
    %22 = arith.addf %19, %21 : vector<64x128xf32>
    %cst_14 = arith.constant 0.000000e+00 : f32
    %23 = vector.broadcast %cst_14 : f32 to vector<64x128xf32>
    %24 = arith.maximumf %22, %23 : vector<64x128xf32>
    %25 = math.absf %22 : vector<64x128xf32>
    %cst_15 = arith.constant 0.000000e+00 : f32
    %26 = vector.broadcast %cst_15 : f32 to vector<64x128xf32>
    %27 = arith.subf %26, %25 : vector<64x128xf32>
    %28 = math.exp %27 : vector<64x128xf32>
    %29 = math.log1p %28 : vector<64x128xf32>
    %30 = arith.addf %24, %29 : vector<64x128xf32>
    %c0_16 = arith.constant 0 : index
    %c0_17 = arith.constant 0 : index
    %31 = vector.load %arg5[%c0_16, %c0_17] : memref<64x128xf32, #tpu.memory_space<vmem>>, vector<64x128xf32>
    tpu.vector_store %arg5[%c0_16, %c0_17], %30 {strides = array<i32>} : memref<64x128xf32, #tpu.memory_space<vmem>>, vector<64x128xf32>,
    return
  }
  func.func @transform_0(%arg0: i32) -> (i32, i32) {
    %c0_i32 = arith.constant 0 : i32
    %c0_i32_0 = arith.constant 0 : i32
    return %arg0, %c0_i32 : i32, i32
  }
  func.func @transform_1(%arg0: i32) -> (i32, i32) {
    %c0_i32 = arith.constant 0 : i32
    %c0_i32_0 = arith.constant 0 : i32
    %c0_i32_1 = arith.constant 0 : i32
    return %c0_i32, %c0_i32_0 : i32, i32
  }
  func.func @transform_2(%arg0: i32) -> (i32, i32) {
    %c0_i32 = arith.constant 0 : i32
    %c0_i32_0 = arith.constant 0 : i32
    %c0_i32_1 = arith.constant 0 : i32
    return %c0_i32, %c0_i32_0 : i32, i32
  }
  func.func @transform_3(%arg0: i32) -> (i32, i32) {
    %c0_i32 = arith.constant 0 : i32
    %c0_i32_0 = arith.constant 0 : i32
    %c0_i32_1 = arith.constant 0 : i32
    return %c0_i32, %c0_i32_0 : i32, i32
  }
  func.func @transform_4(%arg0: i32) -> (i32, i32) {
    %c0_i32 = arith.constant 0 : i32
    %c0_i32_0 = arith.constant 0 : i32
    return %arg0, %c0_i32 : i32, i32
  }
}

module attributes {stable_mosaic.version = 11 : i64} {
  func.func @mlp_kernel(%arg0: i32, %arg1: memref<64x16xf32, #tpu.memory_space<vmem>>, %arg2: memref<16x128xbf16, #tpu.memory_space<vmem>>, %arg3: memref<128x256xbf16, #tpu.memory_space<vmem>>, %arg4: memref<3x128xf32, #tpu.memory_space<vmem>>, %arg5: memref<64x128xf32, #tpu.memory_space<vmem>>) attributes {dimension_semantics = [#tpu.dimension_semantics<parallel>], iteration_bounds = array<i64: 1>, scalar_prefetch = 0 : i64, scratch_operands = 0 : i64, tpu.core_type = #tpu.core_type<tc>, window_params = [{transform_indices = @transform_0, window_bounds = array<i64: 64, 16>}, {pipeline_mode = #tpu.pipeline_mode<synchronous>, transform_indices = @transform_1, window_bounds = array<i64: 16, 128>}, {pipeline_mode = #tpu.pipeline_mode<synchronous>, transform_indices = @transform_2, window_bounds = array<i64: 128, 256>}, {pipeline_mode = #tpu.pipeline_mode<synchronous>, transform_indices = @transform_3, window_bounds = array<i64: 3, 128>}, {transform_indices = @transform_4, window_bounds = array<i64: 64, 128>}]} {
    %c0 = arith.constant 0 : index
    %c0_0 = arith.constant 0 : index
    %0 = vector.load %arg1[%c0, %c0_0] : memref<64x16xf32, #tpu.memory_space<vmem>>, vector<64x16xf32>
    %1 = arith.truncf %0 : vector<64x16xf32> to vector<64x16xbf16>
    %c0_1 = arith.constant 0 : index
    %c0_2 = arith.constant 0 : index
    %2 = vector.load %arg2[%c0_1, %c0_2] : memref<16x128xbf16, #tpu.memory_space<vmem>>, vector<16x128xbf16>
    %cst = arith.constant dense<0.000000e+00> : vector<64x128xf32>
    %3 = tpu.matmul %1, %2, %cst {dimension_numbers = #tpu.dot_dimension_numbers<[1], [0], [0], [1], [0, 0, 1, 1], [], []>} : vector<64x16xbf16>, vector<16x128xbf16>, vector<64x128xf32> -> vector<64x128xf32>
    %c0_3 = arith.constant 0 : index
    %c0_4 = arith.constant 0 : index
    %4 = vector.load %arg4[%c0_3, %c0_4] : memref<3x128xf32, #tpu.memory_space<vmem>>, vector<1x128xf32>
    %5 = vector.broadcast %4 : vector<1x128xf32> to vector<64x128xf32>
    %6 = arith.addf %3, %5 : vector<64x128xf32>
    %cst_5 = arith.constant 0.000000e+00 : f32
    %7 = vector.broadcast %cst_5 : f32 to vector<64x128xf32>
    %8 = arith.maximumf %6, %7 : vector<64x128xf32>
    %9 = arith.truncf %8 : vector<64x128xf32> to vector<64x128xbf16>
    %c0_6 = arith.constant 0 : index
    %c0_7 = arith.constant 0 : index
    %10 = vector.load %arg3[%c0_6, %c0_7] : memref<128x256xbf16, #tpu.memory_space<vmem>>, vector<128x128xbf16>
    %cst_8 = arith.constant dense<0.000000e+00> : vector<64x128xf32>
    %11 = tpu.matmul %9, %10, %cst_8 {dimension_numbers = #tpu.dot_dimension_numbers<[1], [0], [0], [1], [0, 0, 1, 1], [], []>} : vector<64x128xbf16>, vector<128x128xbf16>, vector<64x128xf32> -> vector<64x128xf32>
    %c1 = arith.constant 1 : index
    %c0_9 = arith.constant 0 : index
    %12 = vector.load %arg4[%c1, %c0_9] : memref<3x128xf32, #tpu.memory_space<vmem>>, vector<1x128xf32>
    %13 = vector.broadcast %12 : vector<1x128xf32> to vector<64x128xf32>
    %14 = arith.addf %11, %13 : vector<64x128xf32>
    %cst_10 = arith.constant 0.000000e+00 : f32
    %15 = vector.broadcast %cst_10 : f32 to vector<64x128xf32>
    %16 = arith.maximumf %14, %15 : vector<64x128xf32>
    %17 = arith.truncf %16 : vector<64x128xf32> to vector<64x128xbf16>
    %c0_11 = arith.constant 0 : index
    %c128 = arith.constant 128 : index
    %18 = vector.load %arg3[%c0_11, %c128] : memref<128x256xbf16, #tpu.memory_space<vmem>>, vector<128x128xbf16>
    %cst_12 = arith.constant dense<0.000000e+00> : vector<64x128xf32>
    %19 = tpu.matmul %17, %18, %cst_12 {dimension_numbers = #tpu.dot_dimension_numbers<[1], [0], [0], [1], [0, 0, 1, 1], [], []>} : vector<64x128xbf16>, vector<128x128xbf16>, vector<64x128xf32> -> vector<64x128xf32>
    %c2 = arith.constant 2 : index
    %c0_13 = arith.constant 0 : index
    %20 = vector.load %arg4[%c2, %c0_13] : memref<3x128xf32, #tpu.memory_space<vmem>>, vector<1x128xf32>
    %21 = vector.broadcast %20 : vector<1x128xf32> to vector<64x128xf32>
    %22 = arith.addf %19, %21 : vector<64x128xf32>
    %cst_14 = arith.constant 0.000000e+00 : f32
    %23 = vector.broadcast %cst_14 : f32 to vector<64x128xf32>
    %24 = arith.maximumf %22, %23 : vector<64x128xf32>
    %25 = math.absf %22 : vector<64x128xf32>
    %cst_15 = arith.constant 0.000000e+00 : f32
    %26 = vector.broadcast %cst_15 : f32 to vector<64x128xf32>
    %27 = arith.subf %26, %25 : vector<64x128xf32>
    %28 = math.exp %27 : vector<64x128xf32>
    %29 = math.log1p %28 : vector<64x128xf32>
    %30 = arith.addf %24, %29 : vector<64x128xf32>
    %c0_16 = arith.constant 0 : index
    %c0_17 = arith.constant 0 : index
    %31 = vector.load %arg5[%c0_16, %c0_17] : memref<64x128xf32, #tpu.memory_space<vmem>>, vector<64x128xf32>
    tpu.vector_store %arg5[%c0_16, %c0_17], %30 {strides = array<i32>} : memref<64x128xf32, #tpu.memory_space<vmem>>, vector<64x128xf32>,
    return
  }
  func.func @transform_0(%arg0: i32) -> (i32, i32) {
    %c0_i32 = arith.constant 0 : i32
    %c0_i32_0 = arith.constant 0 : i32
    return %arg0, %c0_i32 : i32, i32
  }
  func.func @transform_1(%arg0: i32) -> (i32, i32) {
    %c0_i32 = arith.constant 0 : i32
    %c0_i32_0 = arith.constant 0 : i32
    %c0_i32_1 = arith.constant 0 : i32
    return %c0_i32, %c0_i32_0 : i32, i32
  }
  func.func @transform_2(%arg0: i32) -> (i32, i32) {
    %c0_i32 = arith.constant 0 : i32
    %c0_i32_0 = arith.constant 0 : i32
    %c0_i32_1 = arith.constant 0 : i32
    return %c0_i32, %c0_i32_0 : i32, i32
  }
  func.func @transform_3(%arg0: i32) -> (i32, i32) {
    %c0_i32 = arith.constant 0 : i32
    %c0_i32_0 = arith.constant 0 : i32
    %c0_i32_1 = arith.constant 0 : i32
    return %c0_i32, %c0_i32_0 : i32, i32
  }
  func.func @transform_4(%arg0: i32) -> (i32, i32) {
    %c0_i32 = arith.constant 0 : i32
    %c0_i32_0 = arith.constant 0 : i32
    return %arg0, %c0_i32 : i32, i32
  }
}

</mosaic_0001>

<bundles_post_ra>
// kernel: tpu_custom_call.1
= control target key start
LH: loop header
LB: loop body
LE: loop exit
PB: predicated region body
PF: predicated region fallthrough
CT: control target
= control target key end

     0   :  { %9 = vsyncpa [#allocation3], 0  ;;  %s958_s0 = inlined_call_operand.vmem [shape: f32[64,16], index: 0, kind: input, shape index: {}]   ;;  %s959_s1 = inlined_call_operand.vmem [shape: bf16[16,128], index: 1, kind: input, shape index: {}]   ;;  %s960_s2 = inlined_call_operand.hbm [shape: bf16[128,256], index: 2, kind: input, shape index: {}]   ;;  %s961_s3 = inlined_call_operand.vmem [shape: f32[3,128], index: 3, kind: input, shape index: {}]   ;;  %s962_s4 = inlined_call_operand.hbm [shape: f32[64,128], index: 4, kind: output, shape index: {}]  }
   0x1   :  { %10 = vsyncpa [#allocation4], 0  ;;  %s785_s15 = smov [#allocation2]   ;;  %s737_s19 = scalar_lea.hbm %s960_s2, 2048 }
   0x2   :  { %s20_s16 = sshll.u32 %s785_s15, 4  ;;  %p738_p0 = scmp.ne.s32.totalorder %s960_s2, %s737_s19  ;;  %s21_s16 = int_to_ptr.vmem [resolvable:$true] %s20_s16 }
   0x3   :  { %p741_p1 = scmp.lt.u32.totalorder %s737_s19, %s960_s2 }
   0x5   :  { %p743_p2 = pnand %p741_p1, %p738_p0 }
   0x7   :  { %746 = shalt.err (!%p743_p2)
}
   0x8   :  { %s747_s24 = scalar_lea.vmem %s21_s16, 2048  ;;  %p752_p4 = scmp.lt.s32.totalorder %s21_s16, %s21_s16 }
   0x9   :  { %p748_p3 = scmp.ne.s32.totalorder %s21_s16, %s747_s24  ;;  %p753_p5 = scmp.lt.s32.totalorder %s747_s24, %s747_s24 }
   0xb   :  { %p754_p6 = por %p753_p5, %p752_p4 }
   0xd   :  { %p755_p7 = pnand %p754_p6, %p748_p3 }
   0xf   :  { %758 = shalt.err (!%p755_p7)
}
  0x10   :  { %s786_s25 = smov 128   ;;  %s787_s26 = smov 8  }
  0x11   :  { %26 = dma.hbm_to_vmem [thread:$0]  %s960_s2, 2048, %s21_s16, [#allocation3], %s786_s25, %s786_s25, %s787_s26  }
  0x12   :  { %781 = dma.done.wait [#allocation3], 2048  }
  0x13   :  { %782 = vsyncadd [#allocation3], 4294965248  ;;  %v688_v0 = vld [vmem:[%s959_s1] sm:$0xff]   ;;  %v34_v2 = vld [vmem:[%s958_s0 + $0x8] sm:$0xff]  ;;  %vm58_vm0 = vcmask 130048  }
  0x14   :  { %v33_v1 = vld [vmem:[%s958_s0] sm:$0xff]  ;;  %v35_v3 = vld [vmem:[%s958_s0 + $0x10] sm:$0xff]  ;;  %626 = vmatprep.subr.bf16.mxu0 %v688_v0  ;;  %v36_v5 = vld [vmem:[%s958_s0 + $0x18] sm:$0xff] }
  0x15   :  { %v41_v4 = vpack.c.bf16 %v34_v2, %v33_v1  ;;  %v37_v6 = vld [vmem:[%s958_s0 + $0x20] sm:$0xff]  ;;  %v38_v7 = vld [vmem:[%s958_s0 + $0x28] sm:$0xff]  ;;  %627 = vmatpush3.bf16.msra.mxu0 %v688_v0  ;;  %v42_v8 = vpack.c.bf16 %v36_v5, %v35_v3  ;;  %v690_v11 = vld [vmem:[#allocation2 + $0x10] ss:$8 sps:$4 sm:$0xff]  }
  0x16   :  { %v43_v9 = vpack.c.bf16 %v38_v7, %v37_v6  ;;  %v689_v10 = vld [vmem:[#allocation2] ss:$8 sps:$4 sm:$0xff]   ;;  %v39_v12 = vld [vmem:[%s958_s0 + $0x30] sm:$0xff]  ;;  %v40_v13 = vld [vmem:[%s958_s0 + $0x38] sm:$0xff] }
  0x17   :  { %628 = vmatprep.mubr.msk.bf16.mxu0 %vm58_vm0, %v41_v4  ;;  %636 = vmatprep.subr.bf16.mxu1 %v689_v10  ;;  %v691_v14 = vld [vmem:[#allocation2 + $0x20] ss:$8 sps:$4 sm:$0xff]   ;;  %v44_v15 = vpack.c.bf16 %v40_v13, %v39_v12  ;;  %v692_v16 = vld [vmem:[#allocation2 + $0x30] ss:$8 sps:$4 sm:$0xff]   ;;  %v697_v21 = vld [vmem:[#allocation2 + $0x4] ss:$8 sps:$4 sm:$0xff]  }
  0x18   :  { %629 = vmatmul.mubr.msk.bf16.vlgmr.msra.gmra.mrb[0].mxu0 %vm58_vm0, %v42_v8  ;;  %637 = vmatpush3.bf16.msra.mxu1 %v689_v10  ;;  %v693_v17 = vld [vmem:[#allocation2 + $0x40] ss:$8 sps:$4 sm:$0xff]   ;;  %v694_v18 = vld [vmem:[#allocation2 + $0x50] ss:$8 sps:$4 sm:$0xff]   ;;  %v698_v22 = vld [vmem:[#allocation2 + $0x14] ss:$8 sps:$4 sm:$0xff]  }
  0x19   :  { %632 = vmatprep.mubr.msk.bf16.mxu0 %vm58_vm0, %v43_v9  ;;  %638 = vmatprep.subr.bf16.mxu1 %v690_v11  ;;  %v695_v19 = vld [vmem:[#allocation2 + $0x60] ss:$8 sps:$4 sm:$0xff]   ;;  %v696_v20 = vld [vmem:[#allocation2 + $0x70] ss:$8 sps:$4 sm:$0xff]   ;;  %v699_v23 = vld [vmem:[#allocation2 + $0x24] ss:$8 sps:$4 sm:$0xff]  }
  0x1a   :  { %660 = vmatprep.subr.bf16.mxu0 %v697_v21  ;;  %v700_v24 = vld [vmem:[#allocation2 + $0x34] ss:$8 sps:$4 sm:$0xff]   ;;  %v701_v25 = vld [vmem:[#allocation2 + $0x44] ss:$8 sps:$4 sm:$0xff]   ;;  %v573_v27 = vld [vmem:[%s961_s3] ss:$0 sm:$0xff] }
  0x1b   :  { %661 = vmatpush3.bf16.msra.mxu0 %v697_v21  ;;  %v702_v26 = vld [vmem:[#allocation2 + $0x54] ss:$8 sps:$4 sm:$0xff]   ;;  %v703_v56 = vld [vmem:[#allocation2 + $0x64] ss:$8 sps:$4 sm:$0xff]   ;;  %v579_v58 = vld [vmem:[%s961_s3 + $0x1] ss:$0 sm:$0xff] }
  0x1c   :  { %639 = vmatpush3.bf16.msra.mxu1 %v690_v11  ;;  %662 = vmatprep.subr.bf16.mxu0 %v698_v22  ;;  %v704_v57 = vld [vmem:[#allocation2 + $0x74] ss:$8 sps:$4 sm:$0xff]  }
  0x1d   :  { %640 = vmatprep.subr.bf16.mxu1 %v691_v14 }
  0x1f   :  { %663 = vmatpush3.bf16.msra.mxu0 %v698_v22 }
  0x20   :  { %633 = vmatmul.mubr.msk.bf16.gmra.mrb[4].mxu0 %vm58_vm0, %v44_v15  ;;  %641 = vmatpush3.bf16.msra.mxu1 %v691_v14 }
  0x21   :  { %642 = vmatprep.subr.bf16.mxu1 %v692_v16  ;;  %664 = vmatprep.subr.bf16.mxu0 %v699_v23 }
  0x23   :  { %665 = vmatpush3.bf16.msra.mxu0 %v699_v23  ;;  %v588_v23 = vld [vmem:[%s961_s3 + $0x2] ss:$0 sm:$0xff]  ;;  %s788_s3 = smov [#allocation5]  }
  0x24   :  { %643 = vmatpush3.bf16.msra.mxu1 %v692_v16  ;;  %666 = vmatprep.subr.bf16.mxu0 %v700_v24  ;;  %s561_s24 = sshll.u32 %s788_s3, 4  ;;  %s562_s24 = int_to_ptr.vmem [resolvable:$true] %s561_s24 }
  0x25   :  { %644 = vmatprep.subr.bf16.mxu1 %v693_v17  ;;  %s759_s27 = scalar_lea.vmem %s562_s24, 1024  ;;  %p764_p9 = scmp.lt.s32.totalorder %s562_s24, %s562_s24 }
  0x26   :  { %p760_p8 = scmp.ne.s32.totalorder %s562_s24, %s759_s27  ;;  %p765_p10 = scmp.lt.s32.totalorder %s759_s27, %s759_s27 }
  0x27   :  { %667 = vmatpush3.bf16.msra.mxu0 %v700_v24 }
  0x28   :  { %645 = vmatpush3.bf16.msra.mxu1 %v693_v17  ;;  %668 = vmatprep.subr.bf16.mxu0 %v701_v25  ;;  %p766_p11 = por %p765_p10, %p764_p9 }
  0x29   :  { %646 = vmatprep.subr.bf16.mxu1 %v694_v18 }
  0x2a   :  { %p767_p12 = pnand %p766_p11, %p760_p8 }
  0x2b   :  { %669 = vmatpush3.bf16.msra.mxu0 %v701_v25 }
  0x2c   :  { %647 = vmatpush3.bf16.msra.mxu1 %v694_v18  ;;  %670 = vmatprep.subr.bf16.mxu0 %v702_v26 }
  0x2d   :  { %648 = vmatprep.subr.bf16.mxu1 %v695_v19 }
  0x2f   :  { %671 = vmatpush3.bf16.msra.mxu0 %v702_v26 }
  0x30   :  { %649 = vmatpush3.bf16.msra.mxu1 %v695_v19  ;;  %672 = vmatprep.subr.bf16.mxu0 %v703_v56 }
  0x31   :  { %650 = vmatprep.subr.bf16.mxu1 %v696_v20 }
  0x33   :  { %673 = vmatpush3.bf16.msra.mxu0 %v703_v56 }
  0x34   :  { %651 = vmatpush3.bf16.msra.mxu1 %v696_v20  ;;  %674 = vmatprep.subr.bf16.mxu0 %v704_v57 }
  0x37   :  { %675 = vmatpush3.bf16.msra.mxu0 %v704_v57 }
  0xeb   :  { %v630_v28 = vpop.f32.mrb[0].mxu0 }
  0xec   :  { %v114_v29 = vadd.f32 %v630_v28, %v573_v27  ;;  %v105_v30 = vpop.f32.mrb[1].mxu0 }
  0xed   :  { %v106_v31 = vadd.f32 %v573_v27, %v105_v30  ;;  %v631_v32 = vpop.f32.mrb[2].mxu0 }
  0xee   :  { %v117_v33 = vadd.f32 %v631_v32, %v573_v27  ;;  %v108_v34 = vpop.f32.mrb[3].mxu0  ;;  %v138_v36 = vmax.f32 %v114_v29, 0.0 }
  0xef   :  { %v109_v35 = vadd.f32 %v573_v27, %v108_v34  ;;  %v136_v38 = vmax.f32 %v106_v31, 0.0 }
  0xf0   :  { %v139_v37 = vmax.f32 %v117_v33, 0.0 }
  0xf1   :  { %v137_v39 = vmax.f32 %v109_v35, 0.0 }
  0xf2   :  { %v145_v40 = vpack.c.bf16 %v139_v37, %v138_v36 }
  0xf3   :  { %v634_v41 = vpop.f32.mrb[4].mxu0  ;;  %v144_v42 = vpack.c.bf16 %v137_v39, %v136_v38 }
  0xf4   :  { %v130_v43 = vadd.f32 %v634_v41, %v573_v27  ;;  %v121_v44 = vpop.f32.mrb[5].mxu0 }
  0xf5   :  { %v122_v45 = vadd.f32 %v573_v27, %v121_v44  ;;  %v635_v46 = vpop.f32.mrb[6].mxu0  ;;  %652 = vmatprep.mubr.bf16.mxu1 %v144_v42 }
  0xf6   :  { %v133_v47 = vadd.f32 %v635_v46, %v573_v27  ;;  %v124_v48 = vpop.f32.mrb[7].mxu0  ;;  %653 = vmatmul.mubr.bf16.vlgmr.msra.gmra.mrb[0].mxu1 %v145_v40  ;;  %v142_v50 = vmax.f32 %v130_v43, 0.0 }
  0xf7   :  { %v125_v49 = vadd.f32 %v573_v27, %v124_v48  ;;  %v140_v52 = vmax.f32 %v122_v45, 0.0 }
  0xf8   :  { %v143_v51 = vmax.f32 %v133_v47, 0.0 }
  0xf9   :  { %v141_v53 = vmax.f32 %v125_v49, 0.0 }
  0xfa   :  { %v147_v54 = vpack.c.bf16 %v143_v51, %v142_v50 }
  0xfb   :  { %v146_v55 = vpack.c.bf16 %v141_v53, %v140_v52 }
  0xfd   :  { %656 = vmatprep.mubr.bf16.mxu1 %v146_v55 }
  0xfe   :  { %657 = vmatmul.mubr.bf16.gmra.mrb[4].mxu1 %v147_v54 }
 0x1c9   :  { %v654_v59 = vpop.f32.mrb[0].mxu1 }
 0x1ca   :  { %v260_v60 = vadd.f32 %v654_v59, %v579_v58  ;;  %v251_v61 = vpop.f32.mrb[1].mxu1 }
 0x1cb   :  { %v252_v62 = vadd.f32 %v579_v58, %v251_v61  ;;  %v655_v63 = vpop.f32.mrb[2].mxu1 }
 0x1cc   :  { %v263_v0 = vadd.f32 %v655_v63, %v579_v58  ;;  %v254_v1 = vpop.f32.mrb[3].mxu1  ;;  %v284_v3 = vmax.f32 %v260_v60, 0.0 }
 0x1cd   :  { %v255_v2 = vadd.f32 %v579_v58, %v254_v1  ;;  %v282_v5 = vmax.f32 %v252_v62, 0.0 }
 0x1ce   :  { %v285_v4 = vmax.f32 %v263_v0, 0.0 }
 0x1cf   :  { %v283_v6 = vmax.f32 %v255_v2, 0.0 }
 0x1d0   :  { %v291_v7 = vpack.c.bf16 %v285_v4, %v284_v3 }
 0x1d1   :  { %v290_v8 = vpack.c.bf16 %v283_v6, %v282_v5  ;;  %v658_v9 = vpop.f32.mrb[4].mxu1 }
 0x1d2   :  { %v276_v10 = vadd.f32 %v658_v9, %v579_v58  ;;  %v267_v11 = vpop.f32.mrb[5].mxu1 }
 0x1d3   :  { %v268_v12 = vadd.f32 %v579_v58, %v267_v11  ;;  %v659_v13 = vpop.f32.mrb[6].mxu1  ;;  %676 = vmatprep.mubr.bf16.mxu0 %v290_v8 }
 0x1d4   :  { %v279_v14 = vadd.f32 %v659_v13, %v579_v58  ;;  %v270_v15 = vpop.f32.mrb[7].mxu1  ;;  %677 = vmatmul.mubr.bf16.vlgmr.msra.gmra.mrb[8].mxu0 %v291_v7  ;;  %v288_v17 = vmax.f32 %v276_v10, 0.0 }
 0x1d5   :  { %v271_v16 = vadd.f32 %v579_v58, %v270_v15  ;;  %v286_v19 = vmax.f32 %v268_v12, 0.0 }
 0x1d6   :  { %v289_v18 = vmax.f32 %v279_v14, 0.0 }
 0x1d7   :  { %v287_v20 = vmax.f32 %v271_v16, 0.0 }
 0x1d8   :  { %v293_v21 = vpack.c.bf16 %v289_v18, %v288_v17 }
 0x1d9   :  { %v292_v22 = vpack.c.bf16 %v287_v20, %v286_v19 }
 0x1db   :  { %680 = vmatprep.mubr.bf16.mxu0 %v292_v22 }
 0x1dc   :  { %681 = vmatmul.mubr.bf16.gmra.mrb[12].mxu0 %v293_v21 }
 0x2a7   :  { %v678_v24 = vpop.f32.mrb[8].mxu0 }
 0x2a8   :  { %v869_v25 = vadd.f32 %v678_v24, %v588_v23  ;;  %v397_v26 = vpop.f32.mrb[9].mxu0 }
 0x2a9   :  { %v871_v27 = vadd.f32 %v588_v23, %v397_v26  ;;  %v679_v28 = vpop.f32.mrb[10].mxu0 }
 0x2aa   :  { %v438_v29 = vand.u32 2147483647, %v869_v25  ;;  %v874_v30 = vadd.f32 %v679_v28, %v588_v23  ;;  %v400_v31 = vpop.f32.mrb[11].mxu0  ;;  %v430_v15 = vmax.f32 %v869_v25, 0.0 }
 0x2ab   :  { %v436_v32 = vand.u32 2147483647, %v871_v27  ;;  %v877_v33 = vadd.f32 %v588_v23, %v400_v31  ;;  %v428_v16 = vmax.f32 %v871_v27, 0.0 }
 0x2ac   :  { %v446_v34 = vsub.f32 0.0, %v438_v29  ;;  %v439_v35 = vand.u32 2147483647, %v874_v30  ;;  %v431_v22 = vmax.f32 %v874_v30, 0.0 }
 0x2ad   :  { %v444_v36 = vsub.f32 0.0, %v436_v32  ;;  %v437_v37 = vand.u32 2147483647, %v877_v33  ;;  %v429_v28 = vmax.f32 %v877_v33, 0.0 }
 0x2ae   :  { %v456_v38 = vmul.f32 1.442695, %v446_v34  ;;  %v447_v39 = vsub.f32 0.0, %v439_v35 }
 0x2af   :  { %v452_v40 = vmul.f32 1.442695, %v444_v36  ;;  %v445_v41 = vsub.f32 0.0, %v437_v37  ;;  %v682_v42 = vpop.f32.mrb[12].mxu0 }
 0x2b0   :  { %705 = vpow2.f32 %v456_v38  ;;  %v458_v43 = vmul.f32 1.442695, %v447_v39  ;;  %v881_v44 = vadd.f32 %v682_v42, %v588_v23  ;;  %v413_v45 = vpop.f32.mrb[13].mxu0 }
 0x2b1   :  { %707 = vpow2.f32 %v452_v40  ;;  %v454_v46 = vmul.f32 1.442695, %v445_v41  ;;  %v883_v47 = vadd.f32 %v588_v23, %v413_v45  ;;  %v683_v48 = vpop.f32.mrb[14].mxu0 }
 0x2b2   :  { %709 = vpow2.f32 %v458_v43  ;;  %v442_v49 = vand.u32 2147483647, %v881_v44  ;;  %v886_v50 = vadd.f32 %v683_v48, %v588_v23  ;;  %v416_v51 = vpop.f32.mrb[15].mxu0 }
 0x2b3   :  { %711 = vpow2.f32 %v454_v46  ;;  %v440_v52 = vand.u32 2147483647, %v883_v47  ;;  %v889_v53 = vadd.f32 %v588_v23, %v416_v51 }
 0x2b4   :  { %v450_v54 = vsub.f32 0.0, %v442_v49  ;;  %v443_v55 = vand.u32 2147483647, %v886_v50 }
 0x2b5   :  { %v448_v56 = vsub.f32 0.0, %v440_v52  ;;  %v441_v57 = vand.u32 2147483647, %v889_v53  ;;  %v433_v27 = vmax.f32 %v889_v53, 0.0 }
 0x2b6   :  { %v464_v58 = vmul.f32 1.442695, %v450_v54  ;;  %v451_v59 = vsub.f32 0.0, %v443_v55 }
 0x2b7   :  { %v460_v60 = vmul.f32 1.442695, %v448_v56  ;;  %v449_v61 = vsub.f32 0.0, %v441_v57 }
 0x2b8   :  { %713 = vpow2.f32 %v464_v58  ;;  %v466_v62 = vmul.f32 1.442695, %v451_v59 }
 0x2b9   :  { %715 = vpow2.f32 %v460_v60  ;;  %v462_v63 = vmul.f32 1.442695, %v449_v61 }
 0x2ba   :  { %v706_v0 = vpop.eup %705  ;;  %717 = vpow2.f32 %v466_v62 }
 0x2bb   :  { %v708_v1 = vpop.eup %707  ;;  %v486_v2 = vadd.f32 1.0, %v706_v0  ;;  %719 = vpow2.f32 %v462_v63  ;;  %v489_v8 = vmul.f32 -0.5, %v706_v0  ;;  %v492_v11 = vand.u32 2147483647, %v706_v0 }
 0x2bc   :  { %v710_v3 = vpop.eup %709  ;;  %v468_v4 = vadd.f32 1.0, %v708_v1  ;;  %v471_v9 = vmul.f32 -0.5, %v708_v1  ;;  %v474_v12 = vand.u32 2147483647, %v708_v1 }
 0x2bd   :  { %v712_v5 = vpop.eup %711  ;;  %721 = vlog2.f32 %v486_v2  ;;  %v495_v6 = vadd.f32 1.0, %v710_v3  ;;  %v498_v13 = vmul.f32 -0.5, %v710_v3  ;;  %v490_v20 = vadd.f32 1.0, %v489_v8 }
 0x2be   :  { %723 = vlog2.f32 %v468_v4  ;;  %v477_v7 = vadd.f32 1.0, %v712_v5  ;;  %v480_v17 = vmul.f32 -0.5, %v712_v5  ;;  %v472_v21 = vadd.f32 1.0, %v471_v9 }
 0x2bf   :  { %725 = vlog2.f32 %v495_v6  ;;  %v501_v26 = vand.u32 2147483647, %v710_v3  ;;  %vm908_vm1 = vcmp.lt.f32.partialorder %v492_v11, 0.0004427343  ;;  %vm912_vm2 = vcmp.lt.f32.partialorder %v474_v12, 0.0004427343 }
 0x2c0   :  { %727 = vlog2.f32 %v477_v7  ;;  %v499_v31 = vadd.f32 1.0, %v498_v13  ;;  %v481_v32 = vadd.f32 1.0, %v480_v17  ;;  %v491_v37 = vmul.f32 %v706_v0, %v490_v20 }
 0x2c1   :  { %v473_v38 = vmul.f32 %v708_v1, %v472_v21  ;;  %v483_v39 = vand.u32 2147483647, %v712_v5  ;;  %vm918_vm3 = vcmp.lt.f32.partialorder %v501_v26, 0.0004427343  ;;  %v432_v11 = vmax.f32 %v883_v47, 0.0 }
 0x2c2   :  { %v893_v10 = vpop.eup %713  ;;  %v500_v48 = vmul.f32 %v710_v3, %v499_v31  ;;  %v482_v55 = vmul.f32 %v712_v5, %v481_v32  ;;  %v434_v5 = vmax.f32 %v881_v44, 0.0 }
 0x2c3   :  { %v895_v14 = vpop.eup %715  ;;  %v522_v18 = vadd.f32 1.0, %v893_v10  ;;  %v525_v34 = vmul.f32 -0.5, %v893_v10  ;;  %vm484_vm4 = vcmp.lt.f32.partialorder %v483_v39, 0.0004427343  ;;  %v528_v62 = vand.u32 2147483647, %v893_v10 }
 0x2c4   :  { %v900_v19 = vpop.eup %717  ;;  %v504_v23 = vadd.f32 1.0, %v895_v14  ;;  %v507_v43 = vmul.f32 -0.5, %v895_v14  ;;  %v510_v1 = vand.u32 2147483647, %v895_v14 }
 0x2c5   :  { %v904_v24 = vpop.eup %719  ;;  %729 = vlog2.f32 %v522_v18  ;;  %v531_v25 = vadd.f32 1.0, %v900_v19  ;;  %v534_v49 = vmul.f32 -0.5, %v900_v19  ;;  %v526_v56 = vadd.f32 1.0, %v525_v34 }
 0x2c6   :  { %731 = vlog2.f32 %v504_v23  ;;  %v513_v33 = vadd.f32 1.0, %v904_v24  ;;  %v516_v60 = vmul.f32 -0.5, %v904_v24  ;;  %v508_v63 = vadd.f32 1.0, %v507_v43 }
 0x2c7   :  { %v722_v30 = vpop.eup %721  ;;  %733 = vlog2.f32 %v531_v25  ;;  %v535_v2 = vadd.f32 1.0, %v534_v49  ;;  %v537_v6 = vand.u32 2147483647, %v900_v19  ;;  %v527_v9 = vmul.f32 %v893_v10, %v526_v56 }
 0x2c8   :  { %v724_v35 = vpop.eup %723  ;;  %v488_v36 = vmul.f32 0.6931472, %v722_v30  ;;  %735 = vlog2.f32 %v513_v33  ;;  %v517_v12 = vadd.f32 1.0, %v516_v60  ;;  %vm529_vm5 = vcmp.lt.f32.partialorder %v528_v62, 0.0004427343 }
 0x2c9   :  { %v726_v40 = vpop.eup %725  ;;  %v470_v41 = vmul.f32 0.6931472, %v724_v35  ;;  %v519_v17 = vand.u32 2147483647, %v904_v24  ;;  %vm511_vm6 = vcmp.lt.f32.partialorder %v510_v1, 0.0004427343  ;;  %v536_v20 = vmul.f32 %v900_v19, %v535_v2 }
 0x2ca   :  { %v494_v45 = vsel %vm908_vm1, %v491_v37, %v488_v36  ;;  %v497_v46 = vmul.f32 0.6931472, %v726_v40  ;;  %v728_v51 = vpop.eup %727  ;;  %v435_v10 = vmax.f32 %v886_v50, 0.0  ;;  %vm538_vm7 = vcmp.lt.f32.partialorder %v537_v6, 0.0004427343 }
 0x2cb   :  { %v542_v52 = vadd.f32 %v494_v45, %v430_v15  ;;  %v476_v54 = vsel %vm912_vm2, %v473_v38, %v470_v41  ;;  %v479_v59 = vmul.f32 0.6931472, %v728_v51  ;;  %v518_v25 = vmul.f32 %v904_v24, %v517_v12 }
 0x2cc   :  { %v540_v57 = vadd.f32 %v476_v54, %v428_v16  ;;  %v503_v58 = vsel %vm918_vm3, %v500_v48, %v497_v46  ;;  %v509_v16 = vmul.f32 %v895_v14, %v508_v63  ;;  %vm520_vm8 = vcmp.lt.f32.partialorder %v519_v17, 0.0004427343 }
 0x2cd   :  { %550 = vst [vmem:[#allocation5 + $0x10] sm:$0xff] %v542_v52  ;;  %v543_v61 = vadd.f32 %v503_v58, %v431_v22  ;;  %v485_v0 = vsel %vm484_vm4, %v482_v55, %v479_v59 }
 0x2ce   :  { %548 = vst [vmem:[#allocation5] sm:$0xff] %v540_v57  ;;  %v541_v4 = vadd.f32 %v485_v0, %v429_v28 }
 0x2cf   :  { %v730_v3 = vpop.eup %729  ;;  %551 = vst [vmem:[#allocation5 + $0x18] sm:$0xff] %v543_v61 }
 0x2d0   :  { %v732_v7 = vpop.eup %731  ;;  %v524_v8 = vmul.f32 0.6931472, %v730_v3  ;;  %549 = vst [vmem:[#allocation5 + $0x8] sm:$0xff] %v541_v4 }
 0x2d1   :  { %v734_v13 = vpop.eup %733  ;;  %v506_v15 = vmul.f32 0.6931472, %v732_v7 }
 0x2d2   :  { %v530_v18 = vsel %vm529_vm5, %v527_v9, %v524_v8  ;;  %v533_v44 = vmul.f32 0.6931472, %v734_v13  ;;  %v736_v21 = vpop.eup %735 }
 0x2d3   :  { %v546_v22 = vadd.f32 %v530_v18, %v434_v5  ;;  %v512_v23 = vsel %vm511_vm6, %v509_v16, %v506_v15  ;;  %v515_v28 = vmul.f32 0.6931472, %v736_v21 }
 0x2d4   :  { %v544_v47 = vadd.f32 %v512_v23, %v432_v11  ;;  %v539_v26 = vsel %vm538_vm7, %v536_v20, %v533_v44 }
 0x2d5   :  { %554 = vst [vmem:[#allocation5 + $0x30] sm:$0xff] %v546_v22  ;;  %v547_v14 = vadd.f32 %v539_v26, %v435_v10  ;;  %v521_v19 = vsel %vm520_vm8, %v518_v25, %v515_v28 }
 0x2d6   :  { %552 = vst [vmem:[#allocation5 + $0x20] sm:$0xff] %v544_v47  ;;  %v545_v29 = vadd.f32 %v521_v19, %v433_v27 }
 0x2d7   :  { %555 = vst [vmem:[#allocation5 + $0x38] sm:$0xff] %v547_v14 }
 0x2d8   :  { %553 = vst [vmem:[#allocation5 + $0x28] sm:$0xff] %v545_v29 }
 0x2d9   :  { %770 = shalt.err (!%p767_p12)
}
 0x2da   :  { %s771_s30 = scalar_lea.hbm %s962_s4, 1024 }
 0x2db   :  { %p772_p13 = scmp.ne.s32.totalorder %s962_s4, %s771_s30  ;;  %p775_p0 = scmp.lt.u32.totalorder %s771_s30, %s962_s4 }
 0x2dd   :  { %p777_p1 = pnand %p775_p0, %p772_p13 }
 0x2df   :  { %780 = shalt.err (!%p777_p1)
}
 0x2e0   :  { %567 = dma.vmem_to_hbm [thread:$0]  %s562_s24, 1024, %s962_s4, [#allocation4], %s786_s25, %s786_s25, %s787_s26  }
 0x2e1   :  { %783 = dma.done.wait [#allocation4], 1024  }
 0x2e2   :  { %784 = vsyncadd [#allocation4], 4294966272 }
 0x2e3   :  { %571 = vsyncpa [#allocation3], 1 }
 0x2e4   :  { %572 = vsyncpa [#allocation4], 1 }

// kernel: tpu_custom_call.1
= control target key start
LH: loop header
LB: loop body
LE: loop exit
PB: predicated region body
PF: predicated region fallthrough
CT: control target
= control target key end

     0   :  { %9 = vsyncpa [#allocation3], 0  ;;  %s958_s0 = inlined_call_operand.vmem [shape: f32[64,16], index: 0, kind: input, shape index: {}]   ;;  %s959_s1 = inlined_call_operand.vmem [shape: bf16[16,128], index: 1, kind: input, shape index: {}]   ;;  %s960_s2 = inlined_call_operand.hbm [shape: bf16[128,256], index: 2, kind: input, shape index: {}]   ;;  %s961_s3 = inlined_call_operand.vmem [shape: f32[3,128], index: 3, kind: input, shape index: {}]   ;;  %s962_s4 = inlined_call_operand.hbm [shape: f32[64,128], index: 4, kind: output, shape index: {}]  }
   0x1   :  { %10 = vsyncpa [#allocation4], 0  ;;  %s785_s15 = smov [#allocation2]   ;;  %s737_s19 = scalar_lea.hbm %s960_s2, 2048 }
   0x2   :  { %s20_s16 = sshll.u32 %s785_s15, 4  ;;  %p738_p0 = scmp.ne.s32.totalorder %s960_s2, %s737_s19  ;;  %s21_s16 = int_to_ptr.vmem [resolvable:$true] %s20_s16 }
   0x3   :  { %p741_p1 = scmp.lt.u32.totalorder %s737_s19, %s960_s2 }
   0x5   :  { %p743_p2 = pnand %p741_p1, %p738_p0 }
   0x7   :  { %746 = shalt.err (!%p743_p2)
}
   0x8   :  { %s747_s24 = scalar_lea.vmem %s21_s16, 2048  ;;  %p752_p4 = scmp.lt.s32.totalorder %s21_s16, %s21_s16 }
   0x9   :  { %p748_p3 = scmp.ne.s32.totalorder %s21_s16, %s747_s24  ;;  %p753_p5 = scmp.lt.s32.totalorder %s747_s24, %s747_s24 }
   0xb   :  { %p754_p6 = por %p753_p5, %p752_p4 }
   0xd   :  { %p755_p7 = pnand %p754_p6, %p748_p3 }
   0xf   :  { %758 = shalt.err (!%p755_p7)
}
  0x10   :  { %s786_s25 = smov 128   ;;  %s787_s26 = smov 8  }
  0x11   :  { %26 = dma.hbm_to_vmem [thread:$0]  %s960_s2, 2048, %s21_s16, [#allocation3], %s786_s25, %s786_s25, %s787_s26  }
  0x12   :  { %781 = dma.done.wait [#allocation3], 2048  }
  0x13   :  { %782 = vsyncadd [#allocation3], 4294965248  ;;  %v688_v0 = vld [vmem:[%s959_s1] sm:$0xff]   ;;  %v34_v2 = vld [vmem:[%s958_s0 + $0x8] sm:$0xff]  ;;  %vm58_vm0 = vcmask 130048  }
  0x14   :  { %v33_v1 = vld [vmem:[%s958_s0] sm:$0xff]  ;;  %v35_v3 = vld [vmem:[%s958_s0 + $0x10] sm:$0xff]  ;;  %626 = vmatprep.subr.bf16.mxu0 %v688_v0  ;;  %v36_v5 = vld [vmem:[%s958_s0 + $0x18] sm:$0xff] }
  0x15   :  { %v41_v4 = vpack.c.bf16 %v34_v2, %v33_v1  ;;  %v37_v6 = vld [vmem:[%s958_s0 + $0x20] sm:$0xff]  ;;  %v38_v7 = vld [vmem:[%s958_s0 + $0x28] sm:$0xff]  ;;  %627 = vmatpush3.bf16.msra.mxu0 %v688_v0  ;;  %v42_v8 = vpack.c.bf16 %v36_v5, %v35_v3  ;;  %v690_v11 = vld [vmem:[#allocation2 + $0x10] ss:$8 sps:$4 sm:$0xff]  }
  0x16   :  { %v43_v9 = vpack.c.bf16 %v38_v7, %v37_v6  ;;  %v689_v10 = vld [vmem:[#allocation2] ss:$8 sps:$4 sm:$0xff]   ;;  %v39_v12 = vld [vmem:[%s958_s0 + $0x30] sm:$0xff]  ;;  %v40_v13 = vld [vmem:[%s958_s0 + $0x38] sm:$0xff] }
  0x17   :  { %628 = vmatprep.mubr.msk.bf16.mxu0 %vm58_vm0, %v41_v4  ;;  %636 = vmatprep.subr.bf16.mxu1 %v689_v10  ;;  %v691_v14 = vld [vmem:[#allocation2 + $0x20] ss:$8 sps:$4 sm:$0xff]   ;;  %v44_v15 = vpack.c.bf16 %v40_v13, %v39_v12  ;;  %v692_v16 = vld [vmem:[#allocation2 + $0x30] ss:$8 sps:$4 sm:$0xff]   ;;  %v697_v21 = vld [vmem:[#allocation2 + $0x4] ss:$8 sps:$4 sm:$0xff]  }
  0x18   :  { %629 = vmatmul.mubr.msk.bf16.vlgmr.msra.gmra.mrb[0].mxu0 %vm58_vm0, %v42_v8  ;;  %637 = vmatpush3.bf16.msra.mxu1 %v689_v10  ;;  %v693_v17 = vld [vmem:[#allocation2 + $0x40] ss:$8 sps:$4 sm:$0xff]   ;;  %v694_v18 = vld [vmem:[#allocation2 + $0x50] ss:$8 sps:$4 sm:$0xff]   ;;  %v698_v22 = vld [vmem:[#allocation2 + $0x14] ss:$8 sps:$4 sm:$0xff]  }
  0x19   :  { %632 = vmatprep.mubr.msk.bf16.mxu0 %vm58_vm0, %v43_v9  ;;  %638 = vmatprep.subr.bf16.mxu1 %v690_v11  ;;  %v695_v19 = vld [vmem:[#allocation2 + $0x60] ss:$8 sps:$4 sm:$0xff]   ;;  %v696_v20 = vld [vmem:[#allocation2 + $0x70] ss:$8 sps:$4 sm:$0xff]   ;;  %v699_v23 = vld [vmem:[#allocation2 + $0x24] ss:$8 sps:$4 sm:$0xff]  }
  0x1a   :  { %660 = vmatprep.subr.bf16.mxu0 %v697_v21  ;;  %v700_v24 = vld [vmem:[#allocation2 + $0x34] ss:$8 sps:$4 sm:$0xff]   ;;  %v701_v25 = vld [vmem:[#allocation2 + $0x44] ss:$8 sps:$4 sm:$0xff]   ;;  %v573_v27 = vld [vmem:[%s961_s3] ss:$0 sm:$0xff] }
  0x1b   :  { %661 = vmatpush3.bf16.msra.mxu0 %v697_v21  ;;  %v702_v26 = vld [vmem:[#allocation2 + $0x54] ss:$8 sps:$4 sm:$0xff]   ;;  %v703_v56 = vld [vmem:[#allocation2 + $0x64] ss:$8 sps:$4 sm:$0xff]   ;;  %v579_v58 = vld [vmem:[%s961_s3 + $0x1] ss:$0 sm:$0xff] }
  0x1c   :  { %639 = vmatpush3.bf16.msra.mxu1 %v690_v11  ;;  %662 = vmatprep.subr.bf16.mxu0 %v698_v22  ;;  %v704_v57 = vld [vmem:[#allocation2 + $0x74] ss:$8 sps:$4 sm:$0xff]  }
  0x1d   :  { %640 = vmatprep.subr.bf16.mxu1 %v691_v14 }
  0x1f   :  { %663 = vmatpush3.bf16.msra.mxu0 %v698_v22 }
  0x20   :  { %633 = vmatmul.mubr.msk.bf16.gmra.mrb[4].mxu0 %vm58_vm0, %v44_v15  ;;  %641 = vmatpush3.bf16.msra.mxu1 %v691_v14 }
  0x21   :  { %642 = vmatprep.subr.bf16.mxu1 %v692_v16  ;;  %664 = vmatprep.subr.bf16.mxu0 %v699_v23 }
  0x23   :  { %665 = vmatpush3.bf16.msra.mxu0 %v699_v23  ;;  %v588_v23 = vld [vmem:[%s961_s3 + $0x2] ss:$0 sm:$0xff]  ;;  %s788_s3 = smov [#allocation5]  }
  0x24   :  { %643 = vmatpush3.bf16.msra.mxu1 %v692_v16  ;;  %666 = vmatprep.subr.bf16.mxu0 %v700_v24  ;;  %s561_s24 = sshll.u32 %s788_s3, 4  ;;  %s562_s24 = int_to_ptr.vmem [resolvable:$true] %s561_s24 }
  0x25   :  { %644 = vmatprep.subr.bf16.mxu1 %v693_v17  ;;  %s759_s27 = scalar_lea.vmem %s562_s24, 1024  ;;  %p764_p9 = scmp.lt.s32.totalorder %s562_s24, %s562_s24 }
  0x26   :  { %p760_p8 = scmp.ne.s32.totalorder %s562_s24, %s759_s27  ;;  %p765_p10 = scmp.lt.s32.totalorder %s759_s27, %s759_s27 }
  0x27   :  { %667 = vmatpush3.bf16.msra.mxu0 %v700_v24 }
  0x28   :  { %645 = vmatpush3.bf16.msra.mxu1 %v693_v17  ;;  %668 = vmatprep.subr.bf16.mxu0 %v701_v25  ;;  %p766_p11 = por %p765_p10, %p764_p9 }
  0x29   :  { %646 = vmatprep.subr.bf16.mxu1 %v694_v18 }
  0x2a   :  { %p767_p12 = pnand %p766_p11, %p760_p8 }
  0x2b   :  { %669 = vmatpush3.bf16.msra.mxu0 %v701_v25 }
  0x2c   :  { %647 = vmatpush3.bf16.msra.mxu1 %v694_v18  ;;  %670 = vmatprep.subr.bf16.mxu0 %v702_v26 }
  0x2d   :  { %648 = vmatprep.subr.bf16.mxu1 %v695_v19 }
  0x2f   :  { %671 = vmatpush3.bf16.msra.mxu0 %v702_v26 }
  0x30   :  { %649 = vmatpush3.bf16.msra.mxu1 %v695_v19  ;;  %672 = vmatprep.subr.bf16.mxu0 %v703_v56 }
  0x31   :  { %650 = vmatprep.subr.bf16.mxu1 %v696_v20 }
  0x33   :  { %673 = vmatpush3.bf16.msra.mxu0 %v703_v56 }
  0x34   :  { %651 = vmatpush3.bf16.msra.mxu1 %v696_v20  ;;  %674 = vmatprep.subr.bf16.mxu0 %v704_v57 }
  0x37   :  { %675 = vmatpush3.bf16.msra.mxu0 %v704_v57 }
  0xeb   :  { %v630_v28 = vpop.f32.mrb[0].mxu0 }
  0xec   :  { %v114_v29 = vadd.f32 %v630_v28, %v573_v27  ;;  %v105_v30 = vpop.f32.mrb[1].mxu0 }
  0xed   :  { %v106_v31 = vadd.f32 %v573_v27, %v105_v30  ;;  %v631_v32 = vpop.f32.mrb[2].mxu0 }
  0xee   :  { %v117_v33 = vadd.f32 %v631_v32, %v573_v27  ;;  %v108_v34 = vpop.f32.mrb[3].mxu0  ;;  %v138_v36 = vmax.f32 %v114_v29, 0.0 }
  0xef   :  { %v109_v35 = vadd.f32 %v573_v27, %v108_v34  ;;  %v136_v38 = vmax.f32 %v106_v31, 0.0 }
  0xf0   :  { %v139_v37 = vmax.f32 %v117_v33, 0.0 }
  0xf1   :  { %v137_v39 = vmax.f32 %v109_v35, 0.0 }
  0xf2   :  { %v145_v40 = vpack.c.bf16 %v139_v37, %v138_v36 }
  0xf3   :  { %v634_v41 = vpop.f32.mrb[4].mxu0  ;;  %v144_v42 = vpack.c.bf16 %v137_v39, %v136_v38 }
  0xf4   :  { %v130_v43 = vadd.f32 %v634_v41, %v573_v27  ;;  %v121_v44 = vpop.f32.mrb[5].mxu0 }
  0xf5   :  { %v122_v45 = vadd.f32 %v573_v27, %v121_v44  ;;  %v635_v46 = vpop.f32.mrb[6].mxu0  ;;  %652 = vmatprep.mubr.bf16.mxu1 %v144_v42 }
  0xf6   :  { %v133_v47 = vadd.f32 %v635_v46, %v573_v27  ;;  %v124_v48 = vpop.f32.mrb[7].mxu0  ;;  %653 = vmatmul.mubr.bf16.vlgmr.msra.gmra.mrb[0].mxu1 %v145_v40  ;;  %v142_v50 = vmax.f32 %v130_v43, 0.0 }
  0xf7   :  { %v125_v49 = vadd.f32 %v573_v27, %v124_v48  ;;  %v140_v52 = vmax.f32 %v122_v45, 0.0 }
  0xf8   :  { %v143_v51 = vmax.f32 %v133_v47, 0.0 }
  0xf9   :  { %v141_v53 = vmax.f32 %v125_v49, 0.0 }
  0xfa   :  { %v147_v54 = vpack.c.bf16 %v143_v51, %v142_v50 }
  0xfb   :  { %v146_v55 = vpack.c.bf16 %v141_v53, %v140_v52 }
  0xfd   :  { %656 = vmatprep.mubr.bf16.mxu1 %v146_v55 }
  0xfe   :  { %657 = vmatmul.mubr.bf16.gmra.mrb[4].mxu1 %v147_v54 }
 0x1c9   :  { %v654_v59 = vpop.f32.mrb[0].mxu1 }
 0x1ca   :  { %v260_v60 = vadd.f32 %v654_v59, %v579_v58  ;;  %v251_v61 = vpop.f32.mrb[1].mxu1 }
 0x1cb   :  { %v252_v62 = vadd.f32 %v579_v58, %v251_v61  ;;  %v655_v63 = vpop.f32.mrb[2].mxu1 }
 0x1cc   :  { %v263_v0 = vadd.f32 %v655_v63, %v579_v58  ;;  %v254_v1 = vpop.f32.mrb[3].mxu1  ;;  %v284_v3 = vmax.f32 %v260_v60, 0.0 }
 0x1cd   :  { %v255_v2 = vadd.f32 %v579_v58, %v254_v1  ;;  %v282_v5 = vmax.f32 %v252_v62, 0.0 }
 0x1ce   :  { %v285_v4 = vmax.f32 %v263_v0, 0.0 }
 0x1cf   :  { %v283_v6 = vmax.f32 %v255_v2, 0.0 }
 0x1d0   :  { %v291_v7 = vpack.c.bf16 %v285_v4, %v284_v3 }
 0x1d1   :  { %v290_v8 = vpack.c.bf16 %v283_v6, %v282_v5  ;;  %v658_v9 = vpop.f32.mrb[4].mxu1 }
 0x1d2   :  { %v276_v10 = vadd.f32 %v658_v9, %v579_v58  ;;  %v267_v11 = vpop.f32.mrb[5].mxu1 }
 0x1d3   :  { %v268_v12 = vadd.f32 %v579_v58, %v267_v11  ;;  %v659_v13 = vpop.f32.mrb[6].mxu1  ;;  %676 = vmatprep.mubr.bf16.mxu0 %v290_v8 }
 0x1d4   :  { %v279_v14 = vadd.f32 %v659_v13, %v579_v58  ;;  %v270_v15 = vpop.f32.mrb[7].mxu1  ;;  %677 = vmatmul.mubr.bf16.vlgmr.msra.gmra.mrb[8].mxu0 %v291_v7  ;;  %v288_v17 = vmax.f32 %v276_v10, 0.0 }
 0x1d5   :  { %v271_v16 = vadd.f32 %v579_v58, %v270_v15  ;;  %v286_v19 = vmax.f32 %v268_v12, 0.0 }
 0x1d6   :  { %v289_v18 = vmax.f32 %v279_v14, 0.0 }
 0x1d7   :  { %v287_v20 = vmax.f32 %v271_v16, 0.0 }
 0x1d8   :  { %v293_v21 = vpack.c.bf16 %v289_v18, %v288_v17 }
 0x1d9   :  { %v292_v22 = vpack.c.bf16 %v287_v20, %v286_v19 }
 0x1db   :  { %680 = vmatprep.mubr.bf16.mxu0 %v292_v22 }
 0x1dc   :  { %681 = vmatmul.mubr.bf16.gmra.mrb[12].mxu0 %v293_v21 }
 0x2a7   :  { %v678_v24 = vpop.f32.mrb[8].mxu0 }
 0x2a8   :  { %v869_v25 = vadd.f32 %v678_v24, %v588_v23  ;;  %v397_v26 = vpop.f32.mrb[9].mxu0 }
 0x2a9   :  { %v871_v27 = vadd.f32 %v588_v23, %v397_v26  ;;  %v679_v28 = vpop.f32.mrb[10].mxu0 }
 0x2aa   :  { %v438_v29 = vand.u32 2147483647, %v869_v25  ;;  %v874_v30 = vadd.f32 %v679_v28, %v588_v23  ;;  %v400_v31 = vpop.f32.mrb[11].mxu0  ;;  %v430_v15 = vmax.f32 %v869_v25, 0.0 }
 0x2ab   :  { %v436_v32 = vand.u32 2147483647, %v871_v27  ;;  %v877_v33 = vadd.f32 %v588_v23, %v400_v31  ;;  %v428_v16 = vmax.f32 %v871_v27, 0.0 }
 0x2ac   :  { %v446_v34 = vsub.f32 0.0, %v438_v29  ;;  %v439_v35 = vand.u32 2147483647, %v874_v30  ;;  %v431_v22 = vmax.f32 %v874_v30, 0.0 }
 0x2ad   :  { %v444_v36 = vsub.f32 0.0, %v436_v32  ;;  %v437_v37 = vand.u32 2147483647, %v877_v33  ;;  %v429_v28 = vmax.f32 %v877_v33, 0.0 }
 0x2ae   :  { %v456_v38 = vmul.f32 1.442695, %v446_v34  ;;  %v447_v39 = vsub.f32 0.0, %v439_v35 }
 0x2af   :  { %v452_v40 = vmul.f32 1.442695, %v444_v36  ;;  %v445_v41 = vsub.f32 0.0, %v437_v37  ;;  %v682_v42 = vpop.f32.mrb[12].mxu0 }
 0x2b0   :  { %705 = vpow2.f32 %v456_v38  ;;  %v458_v43 = vmul.f32 1.442695, %v447_v39  ;;  %v881_v44 = vadd.f32 %v682_v42, %v588_v23  ;;  %v413_v45 = vpop.f32.mrb[13].mxu0 }
 0x2b1   :  { %707 = vpow2.f32 %v452_v40  ;;  %v454_v46 = vmul.f32 1.442695, %v445_v41  ;;  %v883_v47 = vadd.f32 %v588_v23, %v413_v45  ;;  %v683_v48 = vpop.f32.mrb[14].mxu0 }
 0x2b2   :  { %709 = vpow2.f32 %v458_v43  ;;  %v442_v49 = vand.u32 2147483647, %v881_v44  ;;  %v886_v50 = vadd.f32 %v683_v48, %v588_v23  ;;  %v416_v51 = vpop.f32.mrb[15].mxu0 }
 0x2b3   :  { %711 = vpow2.f32 %v454_v46  ;;  %v440_v52 = vand.u32 2147483647, %v883_v47  ;;  %v889_v53 = vadd.f32 %v588_v23, %v416_v51 }
 0x2b4   :  { %v450_v54 = vsub.f32 0.0, %v442_v49  ;;  %v443_v55 = vand.u32 2147483647, %v886_v50 }
 0x2b5   :  { %v448_v56 = vsub.f32 0.0, %v440_v52  ;;  %v441_v57 = vand.u32 2147483647, %v889_v53  ;;  %v433_v27 = vmax.f32 %v889_v53, 0.0 }
 0x2b6   :  { %v464_v58 = vmul.f32 1.442695, %v450_v54  ;;  %v451_v59 = vsub.f32 0.0, %v443_v55 }
 0x2b7   :  { %v460_v60 = vmul.f32 1.442695, %v448_v56  ;;  %v449_v61 = vsub.f32 0.0, %v441_v57 }
 0x2b8   :  { %713 = vpow2.f32 %v464_v58  ;;  %v466_v62 = vmul.f32 1.442695, %v451_v59 }
 0x2b9   :  { %715 = vpow2.f32 %v460_v60  ;;  %v462_v63 = vmul.f32 1.442695, %v449_v61 }
 0x2ba   :  { %v706_v0 = vpop.eup %705  ;;  %717 = vpow2.f32 %v466_v62 }
 0x2bb   :  { %v708_v1 = vpop.eup %707  ;;  %v486_v2 = vadd.f32 1.0, %v706_v0  ;;  %719 = vpow2.f32 %v462_v63  ;;  %v489_v8 = vmul.f32 -0.5, %v706_v0  ;;  %v492_v11 = vand.u32 2147483647, %v706_v0 }
 0x2bc   :  { %v710_v3 = vpop.eup %709  ;;  %v468_v4 = vadd.f32 1.0, %v708_v1  ;;  %v471_v9 = vmul.f32 -0.5, %v708_v1  ;;  %v474_v12 = vand.u32 2147483647, %v708_v1 }
 0x2bd   :  { %v712_v5 = vpop.eup %711  ;;  %721 = vlog2.f32 %v486_v2  ;;  %v495_v6 = vadd.f32 1.0, %v710_v3  ;;  %v498_v13 = vmul.f32 -0.5, %v710_v3  ;;  %v490_v20 = vadd.f32 1.0, %v489_v8 }
 0x2be   :  { %723 = vlog2.f32 %v468_v4  ;;  %v477_v7 = vadd.f32 1.0, %v712_v5  ;;  %v480_v17 = vmul.f32 -0.5, %v712_v5  ;;  %v472_v21 = vadd.f32 1.0, %v471_v9 }
 0x2bf   :  { %725 = vlog2.f32 %v495_v6  ;;  %v501_v26 = vand.u32 2147483647, %v710_v3  ;;  %vm908_vm1 = vcmp.lt.f32.partialorder %v492_v11, 0.0004427343  ;;  %vm912_vm2 = vcmp.lt.f32.partialorder %v474_v12, 0.0004427343 }
 0x2c0   :  { %727 = vlog2.f32 %v477_v7  ;;  %v499_v31 = vadd.f32 1.0, %v498_v13  ;;  %v481_v32 = vadd.f32 1.0, %v480_v17  ;;  %v491_v37 = vmul.f32 %v706_v0, %v490_v20 }
 0x2c1   :  { %v473_v38 = vmul.f32 %v708_v1, %v472_v21  ;;  %v483_v39 = vand.u32 2147483647, %v712_v5  ;;  %vm918_vm3 = vcmp.lt.f32.partialorder %v501_v26, 0.0004427343  ;;  %v432_v11 = vmax.f32 %v883_v47, 0.0 }
 0x2c2   :  { %v893_v10 = vpop.eup %713  ;;  %v500_v48 = vmul.f32 %v710_v3, %v499_v31  ;;  %v482_v55 = vmul.f32 %v712_v5, %v481_v32  ;;  %v434_v5 = vmax.f32 %v881_v44, 0.0 }
 0x2c3   :  { %v895_v14 = vpop.eup %715  ;;  %v522_v18 = vadd.f32 1.0, %v893_v10  ;;  %v525_v34 = vmul.f32 -0.5, %v893_v10  ;;  %vm484_vm4 = vcmp.lt.f32.partialorder %v483_v39, 0.0004427343  ;;  %v528_v62 = vand.u32 2147483647, %v893_v10 }
 0x2c4   :  { %v900_v19 = vpop.eup %717  ;;  %v504_v23 = vadd.f32 1.0, %v895_v14  ;;  %v507_v43 = vmul.f32 -0.5, %v895_v14  ;;  %v510_v1 = vand.u32 2147483647, %v895_v14 }
 0x2c5   :  { %v904_v24 = vpop.eup %719  ;;  %729 = vlog2.f32 %v522_v18  ;;  %v531_v25 = vadd.f32 1.0, %v900_v19  ;;  %v534_v49 = vmul.f32 -0.5, %v900_v19  ;;  %v526_v56 = vadd.f32 1.0, %v525_v34 }
 0x2c6   :  { %731 = vlog2.f32 %v504_v23  ;;  %v513_v33 = vadd.f32 1.0, %v904_v24  ;;  %v516_v60 = vmul.f32 -0.5, %v904_v24  ;;  %v508_v63 = vadd.f32 1.0, %v507_v43 }
 0x2c7   :  { %v722_v30 = vpop.eup %721  ;;  %733 = vlog2.f32 %v531_v25  ;;  %v535_v2 = vadd.f32 1.0, %v534_v49  ;;  %v537_v6 = vand.u32 2147483647, %v900_v19  ;;  %v527_v9 = vmul.f32 %v893_v10, %v526_v56 }
 0x2c8   :  { %v724_v35 = vpop.eup %723  ;;  %v488_v36 = vmul.f32 0.6931472, %v722_v30  ;;  %735 = vlog2.f32 %v513_v33  ;;  %v517_v12 = vadd.f32 1.0, %v516_v60  ;;  %vm529_vm5 = vcmp.lt.f32.partialorder %v528_v62, 0.0004427343 }
 0x2c9   :  { %v726_v40 = vpop.eup %725  ;;  %v470_v41 = vmul.f32 0.6931472, %v724_v35  ;;  %v519_v17 = vand.u32 2147483647, %v904_v24  ;;  %vm511_vm6 = vcmp.lt.f32.partialorder %v510_v1, 0.0004427343  ;;  %v536_v20 = vmul.f32 %v900_v19, %v535_v2 }
 0x2ca   :  { %v494_v45 = vsel %vm908_vm1, %v491_v37, %v488_v36  ;;  %v497_v46 = vmul.f32 0.6931472, %v726_v40  ;;  %v728_v51 = vpop.eup %727  ;;  %v435_v10 = vmax.f32 %v886_v50, 0.0  ;;  %vm538_vm7 = vcmp.lt.f32.partialorder %v537_v6, 0.0004427343 }
 0x2cb   :  { %v542_v52 = vadd.f32 %v494_v45, %v430_v15  ;;  %v476_v54 = vsel %vm912_vm2, %v473_v38, %v470_v41  ;;  %v479_v59 = vmul.f32 0.6931472, %v728_v51  ;;  %v518_v25 = vmul.f32 %v904_v24, %v517_v12 }
 0x2cc   :  { %v540_v57 = vadd.f32 %v476_v54, %v428_v16  ;;  %v503_v58 = vsel %vm918_vm3, %v500_v48, %v497_v46  ;;  %v509_v16 = vmul.f32 %v895_v14, %v508_v63  ;;  %vm520_vm8 = vcmp.lt.f32.partialorder %v519_v17, 0.0004427343 }
 0x2cd   :  { %550 = vst [vmem:[#allocation5 + $0x10] sm:$0xff] %v542_v52  ;;  %v543_v61 = vadd.f32 %v503_v58, %v431_v22  ;;  %v485_v0 = vsel %vm484_vm4, %v482_v55, %v479_v59 }
 0x2ce   :  { %548 = vst [vmem:[#allocation5] sm:$0xff] %v540_v57  ;;  %v541_v4 = vadd.f32 %v485_v0, %v429_v28 }
 0x2cf   :  { %v730_v3 = vpop.eup %729  ;;  %551 = vst [vmem:[#allocation5 + $0x18] sm:$0xff] %v543_v61 }
 0x2d0   :  { %v732_v7 = vpop.eup %731  ;;  %v524_v8 = vmul.f32 0.6931472, %v730_v3  ;;  %549 = vst [vmem:[#allocation5 + $0x8] sm:$0xff] %v541_v4 }
 0x2d1   :  { %v734_v13 = vpop.eup %733  ;;  %v506_v15 = vmul.f32 0.6931472, %v732_v7 }
 0x2d2   :  { %v530_v18 = vsel %vm529_vm5, %v527_v9, %v524_v8  ;;  %v533_v44 = vmul.f32 0.6931472, %v734_v13  ;;  %v736_v21 = vpop.eup %735 }
 0x2d3   :  { %v546_v22 = vadd.f32 %v530_v18, %v434_v5  ;;  %v512_v23 = vsel %vm511_vm6, %v509_v16, %v506_v15  ;;  %v515_v28 = vmul.f32 0.6931472, %v736_v21 }
 0x2d4   :  { %v544_v47 = vadd.f32 %v512_v23, %v432_v11  ;;  %v539_v26 = vsel %vm538_vm7, %v536_v20, %v533_v44 }
 0x2d5   :  { %554 = vst [vmem:[#allocation5 + $0x30] sm:$0xff] %v546_v22  ;;  %v547_v14 = vadd.f32 %v539_v26, %v435_v10  ;;  %v521_v19 = vsel %vm520_vm8, %v518_v25, %v515_v28 }
 0x2d6   :  { %552 = vst [vmem:[#allocation5 + $0x20] sm:$0xff] %v544_v47  ;;  %v545_v29 = vadd.f32 %v521_v19, %v433_v27 }
 0x2d7   :  { %555 = vst [vmem:[#allocation5 + $0x38] sm:$0xff] %v547_v14 }
 0x2d8   :  { %553 = vst [vmem:[#allocation5 + $0x28] sm:$0xff] %v545_v29 }
 0x2d9   :  { %770 = shalt.err (!%p767_p12)
}
 0x2da   :  { %s771_s30 = scalar_lea.hbm %s962_s4, 1024 }
 0x2db   :  { %p772_p13 = scmp.ne.s32.totalorder %s962_s4, %s771_s30  ;;  %p775_p0 = scmp.lt.u32.totalorder %s771_s30, %s962_s4 }
 0x2dd   :  { %p777_p1 = pnand %p775_p0, %p772_p13 }
 0x2df   :  { %780 = shalt.err (!%p777_p1)
}
 0x2e0   :  { %567 = dma.vmem_to_hbm [thread:$0]  %s562_s24, 1024, %s962_s4, [#allocation4], %s786_s25, %s786_s25, %s787_s26  }
 0x2e1   :  { %783 = dma.done.wait [#allocation4], 1024  }
 0x2e2   :  { %784 = vsyncadd [#allocation4], 4294966272 }
 0x2e3   :  { %571 = vsyncpa [#allocation3], 1 }
 0x2e4   :  { %572 = vsyncpa [#allocation4], 1 }

</bundles_post_ra>
